<compile_context>
chip_gen: v7x
topology: tpu7x:2x2x1
jax: 0.10.0
libtpu: 0.0.40
codegen_flags: <defaults>
</compile_context>

<pallas_src>
import functools

import jax
import jax.numpy as jnp
from jax.experimental import pallas as pl
from jax.experimental.pallas import tpu as pltpu

SELU_ALPHA = 1.6732632423543772
SELU_SCALE = 1.0507009873554805

# 3x3 taps in row-major (ky, kx) order; masks and weight layouts use this order.
TAPS = tuple((ky, kx) for ky in range(3) for kx in range(3))


def _selu(x):
    # exp only on the non-positive branch to avoid overflow on the positive side.
    return SELU_SCALE * jnp.where(
        x > 0, x, SELU_ALPHA * (jnp.exp(jnp.minimum(x, 0.0)) - 1.0))


def _make_masks(H, W, dil):
    """(9, H*W) float32 zero-padding masks for a 3x3 conv with dilation `dil`."""
    p = jnp.arange(H * W, dtype=jnp.int32)
    y, xc = p // W, p % W
    rows = []
    for ky, kx in TAPS:
        oy, ox = (ky - 1) * dil, (kx - 1) * dil
        valid = (y + oy >= 0) & (y + oy < H) & (xc + ox >= 0) & (xc + ox < W)
        rows.append(valid.astype(jnp.float32))
    return jnp.stack(rows, axis=0)


# ------------------------------------------------------------------
# Fused TCA kernel: dense conv (MXU) + both depthwise convs (VPU) + residual
# + final BN/SELU.  Whole batch in one step; data is (N*C, H*W) with channels
# (and batch) on sublanes and H*W on lanes.
# ------------------------------------------------------------------
def _tca_fused_kernel(x_ref, wbig_ref, wd1_ref, wd2_ref, bn_ref, m1_ref, *rest,
                      W, d):
    # x_ref:    (NC, HW)      whole batch, rows = n*C + c
    # wbig_ref: (NC, 9*NC)    block-diagonal dense 3x3 weight, BN_a scale folded;
    #                         column layout [tap*NC + n*C + ci]
    # wd1_ref:  (NC, 9)       depthwise 3x3 weight (tiled over batch), BN_b folded
    # wd2_ref:  (NC, 9)       dilated depthwise weight (tiled), BN_c folded
    # bn_ref:   (NC, 5)       columns: shift_a, shift_b, shift_c, scale_f, shift_f
    # m1_ref:   (9, HW)       zero-pad masks, dilation 1
    # [md_ref]: (9, HW)       zero-pad masks, dilation d (only passed when d != 1)
    # out_ref:  (NC, HW)
    # stk_ref:  (9*NC, HW)    VMEM scratch holding the 9 shifted/masked x slabs
    if d == 1:
        out_ref, stk_ref = rest
        md = None
    else:
        md_ref, out_ref, stk_ref = rest
        md = md_ref[...]

    NC, HW = x_ref.shape
    x = x_ref[...]
    m1 = m1_ref[...]

    shift_a = bn_ref[:, 0:1]
    shift_b = bn_ref[:, 1:2]
    shift_c = bn_ref[:, 2:3]
    scale_f = bn_ref[:, 3:4]
    shift_f = bn_ref[:, 4:5]

    # Hoisted per-tap mask broadcasts (JAX does not CSE broadcast_in_dim); each
    # is reused by the dense-conv stacking and the depthwise-1 shifts.
    mb1 = []
    for t in range(9):
        if t == 4:
            mb1.append(None)                       # center tap: no shift, no mask
        else:
            mb1.append(jnp.broadcast_to(m1[t:t + 1, :], (NC, HW)))

    def shifted(v, off, mask):
        # v[r, p + off] with zero padding outside the HxW image (XLU roll + mask).
        if off == 0:
            return v
        return pltpu.roll(v, (-off) % HW, axis=1) * mask

    # ---- dense 3x3 + BN_a + SELU: stack 9 slabs, ONE MXU matmul ----
    for t, (ky, kx) in enumerate(TAPS):
        off = (ky - 1) * W + (kx - 1)
        stk_ref[t * NC:(t + 1) * NC, :] = shifted(x, off, mb1[t])
    b_pre = jnp.dot(wbig_ref[...], stk_ref[...],
                    preferred_element_type=jnp.float32)
    b = _selu(b_pre + shift_a)

    # ---- depthwise 3x3 (+BN_b+SELU) and dilated depthwise (+BN_c+SELU) ----
    wd1 = wd1_ref[...]
    wd2 = wd2_ref[...]
    acc1 = jnp.broadcast_to(shift_b, (NC, HW))     # accumulators start at BN shift
    acc2 = jnp.broadcast_to(shift_c, (NC, HW))
    for t, (ky, kx) in enumerate(TAPS):
        off1 = (ky - 1) * W + (kx - 1)
        bs1 = shifted(b, off1, mb1[t])
        acc1 = acc1 + bs1 * wd1[:, t:t + 1]
        if d == 1:
            bsd = bs1                              # identical taps: reuse the slab
        else:
            offd = (ky - 1) * d * W + (kx - 1) * d
            mdb = None if t == 4 else jnp.broadcast_to(md[t:t + 1, :], (NC, HW))
            bsd = shifted(b, offd, mdb)
        acc2 = acc2 + bsd * wd2[:, t:t + 1]
    b1 = _selu(acc1)
    b2 = _selu(acc2)

    # ---- residual sum + final BN_f + SELU ----
    out_ref[...] = _selu((b + b1 + b2) * scale_f + shift_f)


# ------------------------------------------------------------------
# TCA forward (NCHW in / NCHW out, matching the PyTorch module)
# ------------------------------------------------------------------
def tca_forward(x_nchw, params, d=1):
    N, C, H, W = x_nchw.shape
    HW = H * W
    NC = N * C

    # Fold BN scales into the conv weights (one-time wrapper-side cost).
    wA = params["w_conv"] * params["scale_a"][None, None, None, :]        # (3,3,Ci,Co)
    wA_t = jnp.transpose(wA, (3, 0, 1, 2)).reshape(C, 9, C)               # [co, tap, ci]
    # Block-diagonal (per batch element) dense weight for the (NC, HW) packing:
    # wbig[n*C+co, t*NC + m*C + ci] = wA_t[co, t, ci] * (n == m)
    wbig = jnp.einsum("nm,otc->notmc", jnp.eye(N, dtype=jnp.float32), wA_t)
    wbig = wbig.reshape(NC, 9 * NC)

    wd1 = (jnp.transpose(params["w_dw1"][:, :, 0, :], (2, 0, 1)).reshape(C, 9)
           * params["scale_b"][:, None])                                  # [c, tap]
    wd2 = (jnp.transpose(params["w_dw2"][:, :, 0, :], (2, 0, 1)).reshape(C, 9)
           * params["scale_c"][:, None])
    wd1 = jnp.tile(wd1, (N, 1))                                           # (NC, 9)
    wd2 = jnp.tile(wd2, (N, 1))
    bn = jnp.stack([params["shift_a"], params["shift_b"], params["shift_c"],
                    params["scale_f"], params["shift_f"]], axis=1)        # (C, 5)
    bn = jnp.tile(bn, (N, 1))                                             # (NC, 5)

    m1 = _make_masks(H, W, 1)

    # Sublane/lane-dense layout: (N*C, H*W); whole batch in a single grid step.
    x_flat = x_nchw.reshape(NC, HW)

    operands = [x_flat.astype(jnp.float32), wbig.astype(jnp.float32),
                wd1.astype(jnp.float32), wd2.astype(jnp.float32),
                bn.astype(jnp.float32), m1]
    in_specs = [
        pl.BlockSpec((NC, HW), lambda i: (0, 0)),
        pl.BlockSpec((NC, 9 * NC), lambda i: (0, 0)),
        pl.BlockSpec((NC, 9), lambda i: (0, 0)),
        pl.BlockSpec((NC, 9), lambda i: (0, 0)),
        pl.BlockSpec((NC, 5), lambda i: (0, 0)),
        pl.BlockSpec((9, HW), lambda i: (0, 0)),
    ]
    if d != 1:
        operands.append(_make_masks(H, W, d))
        in_specs.append(pl.BlockSpec((9, HW), lambda i: (0, 0)))

    kernel = functools.partial(_tca_fused_kernel, W=W, d=d)
    out = pl.pallas_call(
        kernel,
        out_shape=jax.ShapeDtypeStruct((NC, HW), jnp.float32),
        grid=(1,),
        in_specs=in_specs,
        out_specs=pl.BlockSpec((NC, HW), lambda i: (0, 0)),
        scratch_shapes=[pltpu.VMEM((9 * NC, HW), jnp.float32)],
        compiler_params=pltpu.CompilerParams(
            dimension_semantics=("arbitrary",)),
    )(*operands)
    return out.reshape(N, C, H, W)


# Pure-JAX reference (XLA convs, unfused params) for correctness checking.
def tca_reference(x_nchw, params, d=1):
    x = jnp.transpose(x_nchw, (0, 2, 3, 1))   # NCHW -> NHWC
    dn = ("NHWC", "HWIO", "NHWC")
    C = x.shape[-1]
    b = jax.lax.conv_general_dilated(x, params["w_conv"], (1, 1),
                                     ((1, 1), (1, 1)), dimension_numbers=dn)
    b = jax.nn.selu(b * params["scale_a"] + params["shift_a"])
    b1 = jax.lax.conv_general_dilated(b, params["w_dw1"], (1, 1), ((1, 1), (1, 1)),
                                      dimension_numbers=dn, feature_group_count=C)
    b1 = jax.nn.selu(b1 * params["scale_b"] + params["shift_b"])
    b2 = jax.lax.conv_general_dilated(b, params["w_dw2"], (1, 1), ((d, d), (d, d)),
                                      rhs_dilation=(d, d),
                                      dimension_numbers=dn, feature_group_count=C)
    b2 = jax.nn.selu(b2 * params["scale_c"] + params["shift_c"])
    s = b + b1 + b2
    out = jax.nn.selu(s * params["scale_f"] + params["shift_f"])
    return jnp.transpose(out, (0, 3, 1, 2))   # NHWC -> NCHW


def _make_bn(key, C, eps=1e-3):
    k1, k2, k3, k4 = jax.random.split(key, 4)
    gamma = 1.0 + 0.1 * jax.random.normal(k1, (C,))
    beta = 0.1 * jax.random.normal(k2, (C,))
    mean = 0.05 * jax.random.normal(k3, (C,))
    var = jax.random.uniform(k4, (C,), minval=0.5, maxval=1.5)
    scale = gamma / jnp.sqrt(var + eps)
    shift = beta - mean * scale
    return scale.astype(jnp.float32), shift.astype(jnp.float32)


if __name__ == "__main__":
    key = jax.random.PRNGKey(0)
    N, C, H, W = 2, 4, 16, 16
    keys = jax.random.split(key, 8)

    x = jax.random.normal(keys[0], (N, C, H, W), jnp.float32)

    # Synthetic parameters (shapes implied by the module, c=C):
    w_conv = 0.2 * jax.random.normal(keys[1], (3, 3, C, C), jnp.float32)   # HWIO
    w_dw1 = 0.3 * jax.random.normal(keys[2], (3, 3, 1, C), jnp.float32)    # depthwise
    w_dw2 = 0.3 * jax.random.normal(keys[3], (3, 3, 1, C), jnp.float32)    # depthwise (dilated)
    sa, ta = _make_bn(keys[4], C)   # BN after conv3x3
    sb, tb = _make_bn(keys[5], C)   # BN after dconv3x3
    sc, tc = _make_bn(keys[6], C)   # BN after ddconv3x3
    sf, tf = _make_bn(keys[7], C)   # final BNPReLU's BN

    params = dict(
        w_conv=w_conv, w_dw1=w_dw1, w_dw2=w_dw2,
        scale_a=sa, shift_a=ta,
        scale_b=sb, shift_b=tb,
        scale_c=sc, shift_c=tc,
        scale_f=sf, shift_f=tf,
    )

    fwd = jax.jit(tca_forward, static_argnames=("d",))

    # Check both the default d=1 (module default) and a dilated d=2 instance.
    # Tolerance 2e-3: the dense conv now runs on the MXU (f32 matmuls are
    # compiler-emulated with bf16 passes on bf16-native MXUs), so leave margin
    # over the pure-VPU 1e-4 bound; structural errors would be O(0.1..1).
    for dil in (1, 2):
        out = jax.block_until_ready(fwd(x, params, d=dil))
        ref = jax.block_until_ready(tca_reference(x, params, d=dil))
        assert out.shape == (N, C, H, W)
        err = float(jnp.max(jnp.abs(out - ref)))
        assert err < 2e-3, (dil, err)

    print("KERNEL_OK")
</pallas_src>

<mosaic_0001>
module attributes {stable_mosaic.version = 11 : i64} {
  func.func @_tca_fused_kernel(%arg0: i32, %arg1: memref<8x256xf32, #tpu.memory_space<vmem>>, %arg2: memref<8x72xf32, #tpu.memory_space<vmem>>, %arg3: memref<8x9xf32, #tpu.memory_space<vmem>>, %arg4: memref<8x9xf32, #tpu.memory_space<vmem>>, %arg5: memref<8x5xf32, #tpu.memory_space<vmem>>, %arg6: memref<9x256xf32, #tpu.memory_space<vmem>>, %arg7: memref<8x256xf32, #tpu.memory_space<vmem>>, %arg8: memref<72x256xf32, #tpu.memory_space<vmem>>) attributes {dimension_semantics = [#tpu.dimension_semantics<arbitrary>], iteration_bounds = array<i64: 1>, scalar_prefetch = 0 : i64, scratch_operands = 1 : i64, tpu.core_type = #tpu.core_type<tc>, window_params = [{pipeline_mode = #tpu.pipeline_mode<synchronous>, transform_indices = @transform_0, window_bounds = array<i64: 8, 256>}, {pipeline_mode = #tpu.pipeline_mode<synchronous>, transform_indices = @transform_1, window_bounds = array<i64: 8, 72>}, {pipeline_mode = #tpu.pipeline_mode<synchronous>, transform_indices = @transform_2, window_bounds = array<i64: 8, 9>}, {pipeline_mode = #tpu.pipeline_mode<synchronous>, transform_indices = @transform_3, window_bounds = array<i64: 8, 9>}, {pipeline_mode = #tpu.pipeline_mode<synchronous>, transform_indices = @transform_4, window_bounds = array<i64: 8, 5>}, {pipeline_mode = #tpu.pipeline_mode<synchronous>, transform_indices = @transform_5, window_bounds = array<i64: 9, 256>}, {pipeline_mode = #tpu.pipeline_mode<synchronous>, transform_indices = @transform_6, window_bounds = array<i64: 8, 256>}]} {
    %c0 = arith.constant 0 : index
    %c0_0 = arith.constant 0 : index
    %0 = vector.load %arg1[%c0, %c0_0] : memref<8x256xf32, #tpu.memory_space<vmem>>, vector<8x256xf32>
    %c0_1 = arith.constant 0 : index
    %c0_2 = arith.constant 0 : index
    %1 = vector.load %arg6[%c0_1, %c0_2] : memref<9x256xf32, #tpu.memory_space<vmem>>, vector<9x256xf32>
    %c0_3 = arith.constant 0 : index
    %c0_4 = arith.constant 0 : index
    %2 = vector.load %arg5[%c0_3, %c0_4] : memref<8x5xf32, #tpu.memory_space<vmem>>, vector<8x1xf32>
    %c0_5 = arith.constant 0 : index
    %c1 = arith.constant 1 : index
    %3 = vector.load %arg5[%c0_5, %c1] : memref<8x5xf32, #tpu.memory_space<vmem>>, vector<8x1xf32>
    %c0_6 = arith.constant 0 : index
    %c2 = arith.constant 2 : index
    %4 = vector.load %arg5[%c0_6, %c2] : memref<8x5xf32, #tpu.memory_space<vmem>>, vector<8x1xf32>
    %c0_7 = arith.constant 0 : index
    %c3 = arith.constant 3 : index
    %5 = vector.load %arg5[%c0_7, %c3] : memref<8x5xf32, #tpu.memory_space<vmem>>, vector<8x1xf32>
    %c0_8 = arith.constant 0 : index
    %c4 = arith.constant 4 : index
    %6 = vector.load %arg5[%c0_8, %c4] : memref<8x5xf32, #tpu.memory_space<vmem>>, vector<8x1xf32>
    %7 = vector.extract_strided_slice %1 {offsets = [0, 0], sizes = [1, 256], strides = [1, 1]} : vector<9x256xf32> to vector<1x256xf32>
    %8 = vector.shape_cast %7 : vector<1x256xf32> to vector<1x256xf32>
    %9 = vector.broadcast %8 : vector<1x256xf32> to vector<8x256xf32>
    %10 = vector.extract_strided_slice %1 {offsets = [1, 0], sizes = [1, 256], strides = [1, 1]} : vector<9x256xf32> to vector<1x256xf32>
    %11 = vector.shape_cast %10 : vector<1x256xf32> to vector<1x256xf32>
    %12 = vector.broadcast %11 : vector<1x256xf32> to vector<8x256xf32>
    %13 = vector.extract_strided_slice %1 {offsets = [2, 0], sizes = [1, 256], strides = [1, 1]} : vector<9x256xf32> to vector<1x256xf32>
    %14 = vector.shape_cast %13 : vector<1x256xf32> to vector<1x256xf32>
    %15 = vector.broadcast %14 : vector<1x256xf32> to vector<8x256xf32>
    %16 = vector.extract_strided_slice %1 {offsets = [3, 0], sizes = [1, 256], strides = [1, 1]} : vector<9x256xf32> to vector<1x256xf32>
    %17 = vector.shape_cast %16 : vector<1x256xf32> to vector<1x256xf32>
    %18 = vector.broadcast %17 : vector<1x256xf32> to vector<8x256xf32>
    %19 = vector.extract_strided_slice %1 {offsets = [5, 0], sizes = [1, 256], strides = [1, 1]} : vector<9x256xf32> to vector<1x256xf32>
    %20 = vector.shape_cast %19 : vector<1x256xf32> to vector<1x256xf32>
    %21 = vector.broadcast %20 : vector<1x256xf32> to vector<8x256xf32>
    %22 = vector.extract_strided_slice %1 {offsets = [6, 0], sizes = [1, 256], strides = [1, 1]} : vector<9x256xf32> to vector<1x256xf32>
    %23 = vector.shape_cast %22 : vector<1x256xf32> to vector<1x256xf32>
    %24 = vector.broadcast %23 : vector<1x256xf32> to vector<8x256xf32>
    %25 = vector.extract_strided_slice %1 {offsets = [7, 0], sizes = [1, 256], strides = [1, 1]} : vector<9x256xf32> to vector<1x256xf32>
    %26 = vector.shape_cast %25 : vector<1x256xf32> to vector<1x256xf32>
    %27 = vector.broadcast %26 : vector<1x256xf32> to vector<8x256xf32>
    %28 = vector.extract_strided_slice %1 {offsets = [8, 0], sizes = [1, 256], strides = [1, 1]} : vector<9x256xf32> to vector<1x256xf32>
    %29 = vector.shape_cast %28 : vector<1x256xf32> to vector<1x256xf32>
    %30 = vector.broadcast %29 : vector<1x256xf32> to vector<8x256xf32>
    %c17_i32 = arith.constant 17 : i32
    %31 = tpu.dynamic_rotate %0 by %c17_i32 dim 1 : vector<8x256xf32>, i32 -> vector<8x256xf32>
    %32 = arith.mulf %31, %9 : vector<8x256xf32>
    %c0_9 = arith.constant 0 : index
    %c0_10 = arith.constant 0 : index
    %33 = vector.load %arg8[%c0_9, %c0_10] : memref<72x256xf32, #tpu.memory_space<vmem>>, vector<8x256xf32>
    tpu.vector_store %arg8[%c0_9, %c0_10], %32 {strides = array<i32>} : memref<72x256xf32, #tpu.memory_space<vmem>>, vector<8x256xf32>,
    %c16_i32 = arith.constant 16 : i32
    %34 = tpu.dynamic_rotate %0 by %c16_i32 dim 1 : vector<8x256xf32>, i32 -> vector<8x256xf32>
    %35 = arith.mulf %34, %12 : vector<8x256xf32>
    %c8 = arith.constant 8 : index
    %c0_11 = arith.constant 0 : index
    %36 = vector.load %arg8[%c8, %c0_11] : memref<72x256xf32, #tpu.memory_space<vmem>>, vector<8x256xf32>
    tpu.vector_store %arg8[%c8, %c0_11], %35 {strides = array<i32>} : memref<72x256xf32, #tpu.memory_space<vmem>>, vector<8x256xf32>,
    %c15_i32 = arith.constant 15 : i32
    %37 = tpu.dynamic_rotate %0 by %c15_i32 dim 1 : vector<8x256xf32>, i32 -> vector<8x256xf32>
    %38 = arith.mulf %37, %15 : vector<8x256xf32>
    %c16 = arith.constant 16 : index
    %c0_12 = arith.constant 0 : index
    %39 = vector.load %arg8[%c16, %c0_12] : memref<72x256xf32, #tpu.memory_space<vmem>>, vector<8x256xf32>
    tpu.vector_store %arg8[%c16, %c0_12], %38 {strides = array<i32>} : memref<72x256xf32, #tpu.memory_space<vmem>>, vector<8x256xf32>,
    %c1_i32 = arith.constant 1 : i32
    %40 = tpu.dynamic_rotate %0 by %c1_i32 dim 1 : vector<8x256xf32>, i32 -> vector<8x256xf32>
    %41 = arith.mulf %40, %18 : vector<8x256xf32>
    %c24 = arith.constant 24 : index
    %c0_13 = arith.constant 0 : index
    %42 = vector.load %arg8[%c24, %c0_13] : memref<72x256xf32, #tpu.memory_space<vmem>>, vector<8x256xf32>
    tpu.vector_store %arg8[%c24, %c0_13], %41 {strides = array<i32>} : memref<72x256xf32, #tpu.memory_space<vmem>>, vector<8x256xf32>,
    %c32 = arith.constant 32 : index
    %c0_14 = arith.constant 0 : index
    %43 = vector.load %arg8[%c32, %c0_14] : memref<72x256xf32, #tpu.memory_space<vmem>>, vector<8x256xf32>
    tpu.vector_store %arg8[%c32, %c0_14], %0 {strides = array<i32>} : memref<72x256xf32, #tpu.memory_space<vmem>>, vector<8x256xf32>,
    %c255_i32 = arith.constant 255 : i32
    %44 = tpu.dynamic_rotate %0 by %c255_i32 dim 1 : vector<8x256xf32>, i32 -> vector<8x256xf32>
    %45 = arith.mulf %44, %21 : vector<8x256xf32>
    %c40 = arith.constant 40 : index
    %c0_15 = arith.constant 0 : index
    %46 = vector.load %arg8[%c40, %c0_15] : memref<72x256xf32, #tpu.memory_space<vmem>>, vector<8x256xf32>
    tpu.vector_store %arg8[%c40, %c0_15], %45 {strides = array<i32>} : memref<72x256xf32, #tpu.memory_space<vmem>>, vector<8x256xf32>,
    %c241_i32 = arith.constant 241 : i32
    %47 = tpu.dynamic_rotate %0 by %c241_i32 dim 1 : vector<8x256xf32>, i32 -> vector<8x256xf32>
    %48 = arith.mulf %47, %24 : vector<8x256xf32>
    %c48 = arith.constant 48 : index
    %c0_16 = arith.constant 0 : index
    %49 = vector.load %arg8[%c48, %c0_16] : memref<72x256xf32, #tpu.memory_space<vmem>>, vector<8x256xf32>
    tpu.vector_store %arg8[%c48, %c0_16], %48 {strides = array<i32>} : memref<72x256xf32, #tpu.memory_space<vmem>>, vector<8x256xf32>,
    %c240_i32 = arith.constant 240 : i32
    %50 = tpu.dynamic_rotate %0 by %c240_i32 dim 1 : vector<8x256xf32>, i32 -> vector<8x256xf32>
    %51 = arith.mulf %50, %27 : vector<8x256xf32>
    %c56 = arith.constant 56 : index
    %c0_17 = arith.constant 0 : index
    %52 = vector.load %arg8[%c56, %c0_17] : memref<72x256xf32, #tpu.memory_space<vmem>>, vector<8x256xf32>
    tpu.vector_store %arg8[%c56, %c0_17], %51 {strides = array<i32>} : memref<72x256xf32, #tpu.memory_space<vmem>>, vector<8x256xf32>,
    %c239_i32 = arith.constant 239 : i32
    %53 = tpu.dynamic_rotate %0 by %c239_i32 dim 1 : vector<8x256xf32>, i32 -> vector<8x256xf32>
    %54 = arith.mulf %53, %30 : vector<8x256xf32>
    %c64 = arith.constant 64 : index
    %c0_18 = arith.constant 0 : index
    %55 = vector.load %arg8[%c64, %c0_18] : memref<72x256xf32, #tpu.memory_space<vmem>>, vector<8x256xf32>
    tpu.vector_store %arg8[%c64, %c0_18], %54 {strides = array<i32>} : memref<72x256xf32, #tpu.memory_space<vmem>>, vector<8x256xf32>,
    %c0_19 = arith.constant 0 : index
    %c0_20 = arith.constant 0 : index
    %56 = vector.load %arg2[%c0_19, %c0_20] : memref<8x72xf32, #tpu.memory_space<vmem>>, vector<8x72xf32>
    %c0_21 = arith.constant 0 : index
    %c0_22 = arith.constant 0 : index
    %57 = vector.load %arg8[%c0_21, %c0_22] : memref<72x256xf32, #tpu.memory_space<vmem>>, vector<72x256xf32>
    %cst = arith.constant dense<0.000000e+00> : vector<8x256xf32>
    %58 = tpu.matmul %56, %57, %cst {dimension_numbers = #tpu.dot_dimension_numbers<[1], [0], [0], [1], [0, 0, 1, 1], [], []>} : vector<8x72xf32>, vector<72x256xf32>, vector<8x256xf32> -> vector<8x256xf32>
    %59 = vector.broadcast %2 : vector<8x1xf32> to vector<8x256xf32>
    %60 = arith.addf %58, %59 : vector<8x256xf32>
    %cst_23 = arith.constant 0.000000e+00 : f32
    %61 = vector.broadcast %cst_23 : f32 to vector<8x256xf32>
    %62 = arith.cmpf ogt, %60, %61 : vector<8x256xf32>
    %cst_24 = arith.constant 0.000000e+00 : f32
    %63 = vector.broadcast %cst_24 : f32 to vector<8x256xf32>
    %64 = arith.minimumf %60, %63 : vector<8x256xf32>
    %65 = math.exp %64 : vector<8x256xf32>
    %cst_25 = arith.constant 1.000000e+00 : f32
    %66 = vector.broadcast %cst_25 : f32 to vector<8x256xf32>
    %67 = arith.subf %65, %66 : vector<8x256xf32>
    %cst_26 = arith.constant 1.67326319 : f32
    %68 = vector.broadcast %cst_26 : f32 to vector<8x256xf32>
    %69 = arith.mulf %68, %67 : vector<8x256xf32>
    %70 = arith.select %62, %60, %69 : vector<8x256xi1>, vector<8x256xf32>
    %cst_27 = arith.constant 1.05070102 : f32
    %71 = vector.broadcast %cst_27 : f32 to vector<8x256xf32>
    %72 = arith.mulf %71, %70 : vector<8x256xf32>
    %c0_28 = arith.constant 0 : index
    %c0_29 = arith.constant 0 : index
    %73 = vector.load %arg3[%c0_28, %c0_29] : memref<8x9xf32, #tpu.memory_space<vmem>>, vector<8x9xf32>
    %c0_30 = arith.constant 0 : index
    %c0_31 = arith.constant 0 : index
    %74 = vector.load %arg4[%c0_30, %c0_31] : memref<8x9xf32, #tpu.memory_space<vmem>>, vector<8x9xf32>
    %75 = vector.shape_cast %3 : vector<8x1xf32> to vector<8x1xf32>
    %76 = vector.broadcast %75 : vector<8x1xf32> to vector<8x256xf32>
    %77 = vector.shape_cast %4 : vector<8x1xf32> to vector<8x1xf32>
    %78 = vector.broadcast %77 : vector<8x1xf32> to vector<8x256xf32>
    %c17_i32_32 = arith.constant 17 : i32
    %79 = tpu.dynamic_rotate %72 by %c17_i32_32 dim 1 : vector<8x256xf32>, i32 -> vector<8x256xf32>
    %80 = arith.mulf %79, %9 : vector<8x256xf32>
    %81 = vector.extract_strided_slice %73 {offsets = [0, 0], sizes = [8, 1], strides = [1, 1]} : vector<8x9xf32> to vector<8x1xf32>
    %82 = vector.broadcast %81 : vector<8x1xf32> to vector<8x256xf32>
    %83 = arith.mulf %80, %82 : vector<8x256xf32>
    %84 = arith.addf %76, %83 : vector<8x256xf32>
    %85 = vector.extract_strided_slice %74 {offsets = [0, 0], sizes = [8, 1], strides = [1, 1]} : vector<8x9xf32> to vector<8x1xf32>
    %86 = vector.broadcast %85 : vector<8x1xf32> to vector<8x256xf32>
    %87 = arith.mulf %80, %86 : vector<8x256xf32>
    %88 = arith.addf %78, %87 : vector<8x256xf32>
    %c16_i32_33 = arith.constant 16 : i32
    %89 = tpu.dynamic_rotate %72 by %c16_i32_33 dim 1 : vector<8x256xf32>, i32 -> vector<8x256xf32>
    %90 = arith.mulf %89, %12 : vector<8x256xf32>
    %91 = vector.extract_strided_slice %73 {offsets = [0, 1], sizes = [8, 1], strides = [1, 1]} : vector<8x9xf32> to vector<8x1xf32>
    %92 = vector.broadcast %91 : vector<8x1xf32> to vector<8x256xf32>
    %93 = arith.mulf %90, %92 : vector<8x256xf32>
    %94 = arith.addf %84, %93 : vector<8x256xf32>
    %95 = vector.extract_strided_slice %74 {offsets = [0, 1], sizes = [8, 1], strides = [1, 1]} : vector<8x9xf32> to vector<8x1xf32>
    %96 = vector.broadcast %95 : vector<8x1xf32> to vector<8x256xf32>
    %97 = arith.mulf %90, %96 : vector<8x256xf32>
    %98 = arith.addf %88, %97 : vector<8x256xf32>
    %c15_i32_34 = arith.constant 15 : i32
    %99 = tpu.dynamic_rotate %72 by %c15_i32_34 dim 1 : vector<8x256xf32>, i32 -> vector<8x256xf32>
    %100 = arith.mulf %99, %15 : vector<8x256xf32>
    %101 = vector.extract_strided_slice %73 {offsets = [0, 2], sizes = [8, 1], strides = [1, 1]} : vector<8x9xf32> to vector<8x1xf32>
    %102 = vector.broadcast %101 : vector<8x1xf32> to vector<8x256xf32>
    %103 = arith.mulf %100, %102 : vector<8x256xf32>
    %104 = arith.addf %94, %103 : vector<8x256xf32>
    %105 = vector.extract_strided_slice %74 {offsets = [0, 2], sizes = [8, 1], strides = [1, 1]} : vector<8x9xf32> to vector<8x1xf32>
    %106 = vector.broadcast %105 : vector<8x1xf32> to vector<8x256xf32>
    %107 = arith.mulf %100, %106 : vector<8x256xf32>
    %108 = arith.addf %98, %107 : vector<8x256xf32>
    %c1_i32_35 = arith.constant 1 : i32
    %109 = tpu.dynamic_rotate %72 by %c1_i32_35 dim 1 : vector<8x256xf32>, i32 -> vector<8x256xf32>
    %110 = arith.mulf %109, %18 : vector<8x256xf32>
    %111 = vector.extract_strided_slice %73 {offsets = [0, 3], sizes = [8, 1], strides = [1, 1]} : vector<8x9xf32> to vector<8x1xf32>
    %112 = vector.broadcast %111 : vector<8x1xf32> to vector<8x256xf32>
    %113 = arith.mulf %110, %112 : vector<8x256xf32>
    %114 = arith.addf %104, %113 : vector<8x256xf32>
    %115 = vector.extract_strided_slice %74 {offsets = [0, 3], sizes = [8, 1], strides = [1, 1]} : vector<8x9xf32> to vector<8x1xf32>
    %116 = vector.broadcast %115 : vector<8x1xf32> to vector<8x256xf32>
    %117 = arith.mulf %110, %116 : vector<8x256xf32>
    %118 = arith.addf %108, %117 : vector<8x256xf32>
    %119 = vector.extract_strided_slice %73 {offsets = [0, 4], sizes = [8, 1], strides = [1, 1]} : vector<8x9xf32> to vector<8x1xf32>
    %120 = vector.broadcast %119 : vector<8x1xf32> to vector<8x256xf32>
    %121 = arith.mulf %72, %120 : vector<8x256xf32>
    %122 = arith.addf %114, %121 : vector<8x256xf32>
    %123 = vector.extract_strided_slice %74 {offsets = [0, 4], sizes = [8, 1], strides = [1, 1]} : vector<8x9xf32> to vector<8x1xf32>
    %124 = vector.broadcast %123 : vector<8x1xf32> to vector<8x256xf32>
    %125 = arith.mulf %72, %124 : vector<8x256xf32>
    %126 = arith.addf %118, %125 : vector<8x256xf32>
    %c255_i32_36 = arith.constant 255 : i32
    %127 = tpu.dynamic_rotate %72 by %c255_i32_36 dim 1 : vector<8x256xf32>, i32 -> vector<8x256xf32>
    %128 = arith.mulf %127, %21 : vector<8x256xf32>
    %129 = vector.extract_strided_slice %73 {offsets = [0, 5], sizes = [8, 1], strides = [1, 1]} : vector<8x9xf32> to vector<8x1xf32>
    %130 = vector.broadcast %129 : vector<8x1xf32> to vector<8x256xf32>
    %131 = arith.mulf %128, %130 : vector<8x256xf32>
    %132 = arith.addf %122, %131 : vector<8x256xf32>
    %133 = vector.extract_strided_slice %74 {offsets = [0, 5], sizes = [8, 1], strides = [1, 1]} : vector<8x9xf32> to vector<8x1xf32>
    %134 = vector.broadcast %133 : vector<8x1xf32> to vector<8x256xf32>
    %135 = arith.mulf %128, %134 : vector<8x256xf32>
    %136 = arith.addf %126, %135 : vector<8x256xf32>
    %c241_i32_37 = arith.constant 241 : i32
    %137 = tpu.dynamic_rotate %72 by %c241_i32_37 dim 1 : vector<8x256xf32>, i32 -> vector<8x256xf32>
    %138 = arith.mulf %137, %24 : vector<8x256xf32>
    %139 = vector.extract_strided_slice %73 {offsets = [0, 6], sizes = [8, 1], strides = [1, 1]} : vector<8x9xf32> to vector<8x1xf32>
    %140 = vector.broadcast %139 : vector<8x1xf32> to vector<8x256xf32>
    %141 = arith.mulf %138, %140 : vector<8x256xf32>
    %142 = arith.addf %132, %141 : vector<8x256xf32>
    %143 = vector.extract_strided_slice %74 {offsets = [0, 6], sizes = [8, 1], strides = [1, 1]} : vector<8x9xf32> to vector<8x1xf32>
    %144 = vector.broadcast %143 : vector<8x1xf32> to vector<8x256xf32>
    %145 = arith.mulf %138, %144 : vector<8x256xf32>
    %146 = arith.addf %136, %145 : vector<8x256xf32>
    %c240_i32_38 = arith.constant 240 : i32
    %147 = tpu.dynamic_rotate %72 by %c240_i32_38 dim 1 : vector<8x256xf32>, i32 -> vector<8x256xf32>
    %148 = arith.mulf %147, %27 : vector<8x256xf32>
    %149 = vector.extract_strided_slice %73 {offsets = [0, 7], sizes = [8, 1], strides = [1, 1]} : vector<8x9xf32> to vector<8x1xf32>
    %150 = vector.broadcast %149 : vector<8x1xf32> to vector<8x256xf32>
    %151 = arith.mulf %148, %150 : vector<8x256xf32>
    %152 = arith.addf %142, %151 : vector<8x256xf32>
    %153 = vector.extract_strided_slice %74 {offsets = [0, 7], sizes = [8, 1], strides = [1, 1]} : vector<8x9xf32> to vector<8x1xf32>
    %154 = vector.broadcast %153 : vector<8x1xf32> to vector<8x256xf32>
    %155 = arith.mulf %148, %154 : vector<8x256xf32>
    %156 = arith.addf %146, %155 : vector<8x256xf32>
    %c239_i32_39 = arith.constant 239 : i32
    %157 = tpu.dynamic_rotate %72 by %c239_i32_39 dim 1 : vector<8x256xf32>, i32 -> vector<8x256xf32>
    %158 = arith.mulf %157, %30 : vector<8x256xf32>
    %159 = vector.extract_strided_slice %73 {offsets = [0, 8], sizes = [8, 1], strides = [1, 1]} : vector<8x9xf32> to vector<8x1xf32>
    %160 = vector.broadcast %159 : vector<8x1xf32> to vector<8x256xf32>
    %161 = arith.mulf %158, %160 : vector<8x256xf32>
    %162 = arith.addf %152, %161 : vector<8x256xf32>
    %163 = vector.extract_strided_slice %74 {offsets = [0, 8], sizes = [8, 1], strides = [1, 1]} : vector<8x9xf32> to vector<8x1xf32>
    %164 = vector.broadcast %163 : vector<8x1xf32> to vector<8x256xf32>
    %165 = arith.mulf %158, %164 : vector<8x256xf32>
    %166 = arith.addf %156, %165 : vector<8x256xf32>
    %cst_40 = arith.constant 0.000000e+00 : f32
    %167 = vector.broadcast %cst_40 : f32 to vector<8x256xf32>
    %168 = arith.cmpf ogt, %162, %167 : vector<8x256xf32>
    %cst_41 = arith.constant 0.000000e+00 : f32
    %169 = vector.broadcast %cst_41 : f32 to vector<8x256xf32>
    %170 = arith.minimumf %162, %169 : vector<8x256xf32>
    %171 = math.exp %170 : vector<8x256xf32>
    %cst_42 = arith.constant 1.000000e+00 : f32
    %172 = vector.broadcast %cst_42 : f32 to vector<8x256xf32>
    %173 = arith.subf %171, %172 : vector<8x256xf32>
    %cst_43 = arith.constant 1.67326319 : f32
    %174 = vector.broadcast %cst_43 : f32 to vector<8x256xf32>
    %175 = arith.mulf %174, %173 : vector<8x256xf32>
    %176 = arith.select %168, %162, %175 : vector<8x256xi1>, vector<8x256xf32>
    %cst_44 = arith.constant 1.05070102 : f32
    %177 = vector.broadcast %cst_44 : f32 to vector<8x256xf32>
    %178 = arith.mulf %177, %176 : vector<8x256xf32>
    %cst_45 = arith.constant 0.000000e+00 : f32
    %179 = vector.broadcast %cst_45 : f32 to vector<8x256xf32>
    %180 = arith.cmpf ogt, %166, %179 : vector<8x256xf32>
    %cst_46 = arith.constant 0.000000e+00 : f32
    %181 = vector.broadcast %cst_46 : f32 to vector<8x256xf32>
    %182 = arith.minimumf %166, %181 : vector<8x256xf32>
    %183 = math.exp %182 : vector<8x256xf32>
    %cst_47 = arith.constant 1.000000e+00 : f32
    %184 = vector.broadcast %cst_47 : f32 to vector<8x256xf32>
    %185 = arith.subf %183, %184 : vector<8x256xf32>
    %cst_48 = arith.constant 1.67326319 : f32
    %186 = vector.broadcast %cst_48 : f32 to vector<8x256xf32>
    %187 = arith.mulf %186, %185 : vector<8x256xf32>
    %188 = arith.select %180, %166, %187 : vector<8x256xi1>, vector<8x256xf32>
    %cst_49 = arith.constant 1.05070102 : f32
    %189 = vector.broadcast %cst_49 : f32 to vector<8x256xf32>
    %190 = arith.mulf %189, %188 : vector<8x256xf32>
    %191 = arith.addf %72, %178 : vector<8x256xf32>
    %192 = arith.addf %191, %190 : vector<8x256xf32>
    %193 = vector.broadcast %5 : vector<8x1xf32> to vector<8x256xf32>
    %194 = arith.mulf %192, %193 : vector<8x256xf32>
    %195 = vector.broadcast %6 : vector<8x1xf32> to vector<8x256xf32>
    %196 = arith.addf %194, %195 : vector<8x256xf32>
    %cst_50 = arith.constant 0.000000e+00 : f32
    %197 = vector.broadcast %cst_50 : f32 to vector<8x256xf32>
    %198 = arith.cmpf ogt, %196, %197 : vector<8x256xf32>
    %cst_51 = arith.constant 0.000000e+00 : f32
    %199 = vector.broadcast %cst_51 : f32 to vector<8x256xf32>
    %200 = arith.minimumf %196, %199 : vector<8x256xf32>
    %201 = math.exp %200 : vector<8x256xf32>
    %cst_52 = arith.constant 1.000000e+00 : f32
    %202 = vector.broadcast %cst_52 : f32 to vector<8x256xf32>
    %203 = arith.subf %201, %202 : vector<8x256xf32>
    %cst_53 = arith.constant 1.67326319 : f32
    %204 = vector.broadcast %cst_53 : f32 to vector<8x256xf32>
    %205 = arith.mulf %204, %203 : vector<8x256xf32>
    %206 = arith.select %198, %196, %205 : vector<8x256xi1>, vector<8x256xf32>
    %cst_54 = arith.constant 1.05070102 : f32
    %207 = vector.broadcast %cst_54 : f32 to vector<8x256xf32>
    %208 = arith.mulf %207, %206 : vector<8x256xf32>
    %c0_55 = arith.constant 0 : index
    %c0_56 = arith.constant 0 : index
    %209 = vector.load %arg7[%c0_55, %c0_56] : memref<8x256xf32, #tpu.memory_space<vmem>>, vector<8x256xf32>
    tpu.vector_store %arg7[%c0_55, %c0_56], %208 {strides = array<i32>} : memref<8x256xf32, #tpu.memory_space<vmem>>, vector<8x256xf32>,
    return
  }
  func.func @transform_0(%arg0: i32) -> (i32, i32) {
    %c0_i32 = arith.constant 0 : i32
    %c0_i32_0 = arith.constant 0 : i32
    %c0_i32_1 = arith.constant 0 : i32
    return %c0_i32, %c0_i32_0 : i32, i32
  }
  func.func @transform_1(%arg0: i32) -> (i32, i32) {
    %c0_i32 = arith.constant 0 : i32
    %c0_i32_0 = arith.constant 0 : i32
    %c0_i32_1 = arith.constant 0 : i32
    return %c0_i32, %c0_i32_0 : i32, i32
  }
  func.func @transform_2(%arg0: i32) -> (i32, i32) {
    %c0_i32 = arith.constant 0 : i32
    %c0_i32_0 = arith.constant 0 : i32
    %c0_i32_1 = arith.constant 0 : i32
    return %c0_i32, %c0_i32_0 : i32, i32
  }
  func.func @transform_3(%arg0: i32) -> (i32, i32) {
    %c0_i32 = arith.constant 0 : i32
    %c0_i32_0 = arith.constant 0 : i32
    %c0_i32_1 = arith.constant 0 : i32
    return %c0_i32, %c0_i32_0 : i32, i32
  }
  func.func @transform_4(%arg0: i32) -> (i32, i32) {
    %c0_i32 = arith.constant 0 : i32
    %c0_i32_0 = arith.constant 0 : i32
    %c0_i32_1 = arith.constant 0 : i32
    return %c0_i32, %c0_i32_0 : i32, i32
  }
  func.func @transform_5(%arg0: i32) -> (i32, i32) {
    %c0_i32 = arith.constant 0 : i32
    %c0_i32_0 = arith.constant 0 : i32
    %c0_i32_1 = arith.constant 0 : i32
    return %c0_i32, %c0_i32_0 : i32, i32
  }
  func.func @transform_6(%arg0: i32) -> (i32, i32) {
    %c0_i32 = arith.constant 0 : i32
    %c0_i32_0 = arith.constant 0 : i32
    %c0_i32_1 = arith.constant 0 : i32
    return %c0_i32, %c0_i32_0 : i32, i32
  }
}

</mosaic_0001>

<bundles_post_ra>
// kernel: tca_forward.1
= control target key start
LH: loop header
LB: loop body
LE: loop exit
PB: predicated region body
PF: predicated region fallthrough
CT: control target
= control target key end

     0   :  { %s669_s23 = smov 16   ;;  %s670_s24 = smov 17   ;;  %v675_v2 = vmov 0.0   ;;  %v676_v3 = vmov 0   ;;  %v679_v7 = vmov 1   ;;  %v680_v8 = vmov 2   ;;  %s1086_s0 = inlined_call_operand.vmem [shape: f32[8,256], index: 0, kind: input, shape index: {}]   ;;  %s1087_s4 = inlined_call_operand.vmem [shape: f32[8,5], index: 4, kind: input, shape index: {}]   ;;  %s1088_s2 = inlined_call_operand.vmem [shape: f32[8,9], index: 2, kind: input, shape index: {}]   ;;  %s1089_s3 = inlined_call_operand.vmem [shape: f32[8,9], index: 3, kind: input, shape index: {}]   ;;  %s1090_s5 = inlined_call_operand.vmem [shape: f32[9,256], index: 5, kind: input, shape index: {}]   ;;  %s1091_s1 = inlined_call_operand.vmem [shape: f32[8,72], index: 1, kind: input, shape index: {}]   ;;  %s1092_s6 = inlined_call_operand.vmem [shape: f32[8,256], index: 6, kind: output, shape index: {}]  }
   0x1   :  { %v725_v0 = vld [vmem:[%s1086_s0] sm:$0xff]  ;;  %v734_v1 = vld [vmem:[%s1086_s0 + $0x8] sm:$0xff]  ;;  %s671_s27 = smov 15   ;;  %s672_s28 = smov 1   ;;  %278 = vmatprep.mubr.f32.mxu0 %v675_v2  ;;  %636 = vset.pattern.permute.xlu0 %v676_v3  ;;  %v681_v9 = vmov 3   ;;  %v682_v10 = vmov 4   ;;  %v30_v12 = vlaneseq }
   0x2   :  { %107 = vrot.lane.b32.xlu1 %v725_v0, %s669_s23  ;;  %94 = vrot.lane.b32.xlu0 %v725_v0, %s670_s24  ;;  %s673_s0 = smov 127   ;;  %s674_s29 = smov 113   ;;  %v767_v4 = vld [vmem:[%s1087_s4] sm:$0xff]  ;;  %v683_v11 = vmov 5   ;;  %v811_v18 = vld [vmem:[%s1090_s5 + $0x8] sm:$0xff]  ;;  %vm210_vm8 = vcmask 588800  }
   0x3   :  { %637 = vset.pattern.permute.xlu1 %v676_v3  ;;  %s677_s30 = smov 112   ;;  %s678_s7 = smov 111   ;;  %v772_v5 = vld [vmem:[%s1088_s2] sm:$0xff]  ;;  %v797_v13 = vshrl.u32 %v30_v12, 7  ;;  %v799_v14 = vand.u32 127, %v30_v12 }
   0x4   :  { %v779_v6 = vld [vmem:[%s1089_s3] sm:$0xff] }
   0x5   :  { %v40_v15 = vsub.s32 1, %v797_v13  ;;  %v32_v16 = vsub.s32 0, %v797_v13  ;;  %v806_v17 = vld [vmem:[%s1090_s5] sm:$0xff]  ;;  %vm111_vm0 = vcmp.lt.s32.totalorder %v799_v14, 16  ;;  %vm100_vm1 = vcmp.lt.s32.totalorder %v799_v14, 17 }
   0x6   :  { %109 = vrot.lane.b32.xlu1 %v734_v1, %s669_s23  ;;  %96 = vrot.lane.b32.xlu0 %v734_v1, %s670_s24  ;;  %v48_v27 = vsub.s32 2, %v797_v13  ;;  %v56_v28 = vsub.s32 3, %v797_v13  ;;  %vm122_vm2 = vcmp.lt.s32.totalorder %v799_v14, 15  ;;  %v64_v41 = vsub.s32 5, %v797_v13 }
   0x7   :  { %v816_v21 = vrot.slane %v806_v17, %v40_v15  ;;  %v819_v22 = vrot.slane %v806_v17, %v32_v16  ;;  %v822_v23 = vrot.slane %v811_v18, %v32_v16  ;;  %v825_v24 = vrot.slane %v811_v18, %v40_v15 }
   0x8   :  { %vm133_vm3 = vcmp.lt.s32.totalorder %v799_v14, 1  ;;  %v845_v42 = vrot.slane %v806_v17, %v48_v27  ;;  %v848_v43 = vrot.slane %v811_v18, %v48_v27  ;;  %v851_v44 = vrot.slane %v806_v17, %v56_v28 }
   0x9   :  { %v854_v45 = vrot.slane %v811_v18, %v56_v28  ;;  %v861_v50 = vrot.slane %v806_v17, %v64_v41  ;;  %v868_v53 = vrot.slane %v811_v18, %v64_v41  ;;  %vm146_vm4 = vcmp.lt.s32.totalorder %v799_v14, 127 }
   0xa   :  { %120 = vrot.lane.b32.xlu1 %v734_v1, %s671_s27  ;;  %118 = vrot.lane.b32.xlu0 %v725_v0, %s671_s27  ;;  %v72_v2 = vsub.s32 6, %v797_v13  ;;  %vm157_vm5 = vcmp.lt.s32.totalorder %v799_v14, 113  ;;  %vm168_vm6 = vcmp.lt.s32.totalorder %v799_v14, 112  ;;  %vm179_vm7 = vcmp.lt.s32.totalorder %v799_v14, 111 }
   0xe   :  { %131 = vrot.lane.b32.xlu1 %v734_v1, %s672_s28  ;;  %129 = vrot.lane.b32.xlu0 %v725_v0, %s672_s28 }
  0x12   :  { %144 = vrot.lane.b32.xlu1 %v734_v1, %s673_s0  ;;  %142 = vrot.lane.b32.xlu0 %v725_v0, %s673_s0 }
  0x16   :  { %155 = vrot.lane.b32.xlu1 %v734_v1, %s674_s29  ;;  %153 = vrot.lane.b32.xlu0 %v725_v0, %s674_s29 }
  0x1a   :  { %166 = vrot.lane.b32.xlu1 %v734_v1, %s677_s30  ;;  %164 = vrot.lane.b32.xlu0 %v725_v0, %s677_s30 }
  0x1e   :  { %177 = vrot.lane.b32.xlu1 %v734_v1, %s678_s7  ;;  %175 = vrot.lane.b32.xlu0 %v725_v0, %s678_s7 }
  0x22   :  { %207 = vperm.xlu0 %636, %v767_v4   ;;  %321 = vperm.xlu1 %637, %v772_v5  }
  0x26   :  { %330 = vperm.xlu0 %636, %v779_v6   ;;  %638 = vset.pattern.permute.xlu1 %v679_v7 }
  0x27   :  { %304 = vperm.xlu1 %638, %v767_v4  }
  0x2a   :  { %639 = vset.pattern.permute.xlu0 %v680_v8 }
  0x2b   :  { %308 = vperm.xlu0 %639, %v767_v4   ;;  %346 = vperm.xlu1 %638, %v772_v5  }
  0x2f   :  { %640 = vset.pattern.permute.xlu0 %v679_v7  ;;  %641 = vset.pattern.permute.xlu1 %v680_v8  ;;  %v80_v8 = vsub.s32 7, %v797_v13 }
  0x30   :  { %354 = vperm.xlu0 %640, %v779_v6   ;;  %370 = vperm.xlu1 %641, %v772_v5  }
  0x31   :  { %v896_v13 = vrot.slane %v811_v18, %v80_v8 }
  0x34   :  { %642 = vset.pattern.permute.xlu0 %v681_v9  ;;  %378 = vperm.xlu1 %641, %v779_v6  }
  0x35   :  { %394 = vperm.xlu0 %642, %v772_v5  }
  0x38   :  { %643 = vset.pattern.permute.xlu1 %v682_v10 }
  0x39   :  { %402 = vperm.xlu0 %642, %v779_v6   ;;  %410 = vperm.xlu1 %643, %v772_v5  }
  0x3d   :  { %644 = vset.pattern.permute.xlu0 %v682_v10  ;;  %645 = vset.pattern.permute.xlu1 %v683_v11 }
  0x3e   :  { %418 = vperm.xlu0 %644, %v779_v6   ;;  %434 = vperm.xlu1 %645, %v772_v5  }
  0x42   :  { %442 = vperm.xlu1 %645, %v779_v6  }
  0x74   :  { %v108_v19 = vpop.permute.xlu1 %107  ;;  %v95_v20 = vpop.permute.xlu0 %94 }
  0x78   :  { %v110_v25 = vpop.permute.xlu1 %109  ;;  %v97_v26 = vpop.permute.xlu0 %96 }
  0x79   :  { %v112_v29 = vsel %vm111_vm0, %v108_v19, %v110_v25  ;;  %v113_v30 = vsel %vm111_vm0, %v110_v25, %v108_v19  ;;  %v101_v31 = vsel %vm100_vm1, %v95_v20, %v97_v26  ;;  %v102_v32 = vsel %vm100_vm1, %v97_v26, %v95_v20 }
  0x7a   :  { %v114_v33 = vmul.f32 %v113_v30, %v816_v21  ;;  %v103_v34 = vmul.f32 %v102_v32, %v819_v22  ;;  %v104_v35 = vmul.f32 %v101_v31, %v822_v23  ;;  %v115_v36 = vmul.f32 %v112_v29, %v825_v24  ;;  %v915_v32 = vld [vmem:[%s1090_s5 + $0x18] ss:$0 sm:$0xff] }
  0x7b   :  { %v887_v19 = vrot.slane %v806_v17, %v72_v2  ;;  %v890_v20 = vrot.slane %v811_v18, %v72_v2  ;;  %v893_v25 = vrot.slane %v806_v17, %v80_v8 }
  0x7c   :  { %v121_v37 = vpop.permute.xlu1 %120  ;;  %v119_v38 = vpop.permute.xlu0 %118  ;;  %v602_v39 = vpack.c.bf16 %v115_v36, %v104_v35  ;;  %v604_v40 = vpack.c.bf16 %v114_v33, %v103_v34  ;;  %v920_v35 = vld [vmem:[%s1090_s5 + $0x10] ss:$0 sm:$0xff] }
  0x7d   :  { %v123_v46 = vsel %vm122_vm2, %v119_v38, %v121_v37  ;;  %v124_v47 = vsel %vm122_vm2, %v121_v37, %v119_v38 }
  0x7e   :  { %603 = vmatprep.subr.bf16.mxu0 %v602_v39  ;;  %v125_v54 = vmul.f32 %v124_v47, %v845_v42  ;;  %v126_v55 = vmul.f32 %v123_v46, %v848_v43  ;;  %v186_v46 = vld [vmem:[%s1091_s1] sm:$0xff]  ;;  %v684_v47 = vmov 6  }
  0x7f   :  { %605 = vmatpush1.bf16.msra.mxu0 %v604_v40  ;;  %646 = vset.pattern.permute.xlu0 %v684_v47 }
  0x80   :  { %v132_v48 = vpop.permute.xlu1 %131  ;;  %v130_v49 = vpop.permute.xlu0 %129  ;;  %458 = vperm.xlu0 %646, %v772_v5  }
  0x81   :  { %v134_v51 = vsel %vm133_vm3, %v130_v49, %v132_v48  ;;  %v135_v52 = vsel %vm133_vm3, %v132_v48, %v130_v49  ;;  %v685_v48 = vmov 7   ;;  %v686_v49 = vmov 8  }
  0x82   :  { %v136_v56 = vmul.f32 %v135_v52, %v851_v44  ;;  %v137_v57 = vmul.f32 %v134_v51, %v854_v45  ;;  %647 = vset.pattern.permute.xlu1 %v685_v48 }
  0x83   :  { %482 = vperm.xlu1 %647, %v772_v5  }
  0x84   :  { %v145_v58 = vpop.permute.xlu1 %144  ;;  %v143_v59 = vpop.permute.xlu0 %142  ;;  %v606_v60 = vpack.c.bf16 %v137_v57, %v126_v55  ;;  %v608_v61 = vpack.c.bf16 %v136_v56, %v125_v54  ;;  %466 = vperm.xlu0 %646, %v779_v6  }
  0x85   :  { %v147_v62 = vsel %vm146_vm4, %v143_v59, %v145_v58  ;;  %v148_v63 = vsel %vm146_vm4, %v145_v58, %v143_v59 }
  0x86   :  { %v149_v3 = vmul.f32 %v147_v62, %v861_v50  ;;  %v150_v7 = vmul.f32 %v148_v63, %v868_v53  ;;  %607 = vmatprep.subr.bf16.mxu0 %v606_v60 }
  0x87   :  { %609 = vmatpush1.bf16.msra.mxu0 %v608_v61  ;;  %649 = vset.pattern.permute.xlu1 %v686_v49 }
  0x88   :  { %v156_v11 = vpop.permute.xlu1 %155  ;;  %v154_v12 = vpop.permute.xlu0 %153  ;;  %v610_v15 = vpack.c.bf16 %v150_v7, %v734_v1  ;;  %v612_v16 = vpack.c.bf16 %v149_v3, %v725_v0  ;;  %648 = vset.pattern.permute.xlu0 %v685_v48 }
  0x89   :  { %v158_v1 = vsel %vm157_vm5, %v154_v12, %v156_v11  ;;  %v159_v0 = vsel %vm157_vm5, %v156_v11, %v154_v12 }
  0x8a   :  { %611 = vmatprep.subr.bf16.mxu0 %v610_v15  ;;  %v160_v18 = vmul.f32 %v158_v1, %v887_v19  ;;  %v161_v29 = vmul.f32 %v159_v0, %v890_v20 }
  0x8b   :  { %613 = vmatpush1.bf16.msra.mxu0 %v612_v16 }
  0x8c   :  { %v167_v26 = vpop.permute.xlu1 %166  ;;  %v165_v27 = vpop.permute.xlu0 %164 }
  0x8d   :  { %v169_v28 = vsel %vm168_vm6, %v165_v27, %v167_v26  ;;  %v170_v17 = vsel %vm168_vm6, %v167_v26, %v165_v27 }
  0x8e   :  { %v171_v30 = vmul.f32 %v169_v28, %v893_v25  ;;  %v172_v31 = vmul.f32 %v170_v17, %v896_v13 }
  0x90   :  { %v178_v33 = vpop.permute.xlu1 %177  ;;  %v614_v34 = vpack.c.bf16 %v172_v31, %v161_v29  ;;  %v176_v36 = vpop.permute.xlu0 %175  ;;  %v616_v37 = vpack.c.bf16 %v171_v30, %v160_v18 }
  0x91   :  { %v180_v38 = vsel %vm179_vm7, %v176_v36, %v178_v33  ;;  %v181_v39 = vsel %vm179_vm7, %v178_v33, %v176_v36 }
  0x92   :  { %615 = vmatprep.subr.bf16.mxu0 %v614_v34  ;;  %v183_v40 = vmul.f32 %v915_v32, %v181_v39  ;;  %v182_v41 = vmul.f32 %v920_v35, %v180_v38 }
  0x93   :  { %617 = vmatpush1.bf16.msra.mxu0 %v616_v37 }
  0x94   :  { %230 = vmatprep.subr.mxu0 %v183_v40 }
  0x97   :  { %231 = vmatpush1.msra.mxu0 %v182_v41 }
  0x98   :  { %593 = vmatmul.mubr.msk.f32.vlgmr.msra.gmra.mrb[0].mxu0 %vm210_vm8, %v186_v46 }
  0xa1   :  { %v208_v51 = vpop.permute.xlu0 %207 }
 0x16b   :  { %v280_v52 = vpop.f32.mrb[0].mxu0 }
 0x16c   :  { %v281_v54 = vadd.f32 %v280_v52, %v208_v51  ;;  %v282_v55 = vpop.f32.mrb[1].mxu0 }
 0x16d   :  { %v283_v56 = vadd.f32 %v282_v55, %v208_v51 }
 0x16e   :  { %v287_v57 = vmin.f32 %v281_v54, 0.0  ;;  %vm285_vm9 = vcmp.gt.f32.partialorder %v281_v54, 0.0 }
 0x16f   :  { %v288_v58 = vmin.f32 %v283_v56, 0.0  ;;  %vm286_vm10 = vcmp.gt.f32.partialorder %v283_v56, 0.0 }
 0x170   :  { %v289_v59 = vmul.f32 1.442695, %v287_v57 }
 0x171   :  { %v291_v60 = vmul.f32 1.442695, %v288_v58 }
 0x172   :  { %653 = vpow2.f32 %v289_v59 }
 0x173   :  { %655 = vpow2.f32 %v291_v60 }
 0x17c   :  { %v654_v61 = vpop.eup %653 }
 0x17d   :  { %v656_v62 = vpop.eup %655  ;;  %v594_v63 = vadd.f32 -1.0, %v654_v61 }
 0x17e   :  { %v595_v3 = vadd.f32 -1.0, %v656_v62 }
 0x17f   :  { %v295_v2 = vmul.f32 1.6732632, %v594_v63 }
 0x180   :  { %v296_v11 = vmul.f32 1.6732632, %v595_v3 }
 0x181   :  { %v297_v7 = vsel %vm285_vm9, %v281_v54, %v295_v2 }
 0x182   :  { %v934_v8 = vmul.f32 1.050701, %v297_v7  ;;  %v298_v12 = vsel %vm286_vm10, %v283_v56, %v296_v11 }
 0x183   :  { %v944_v15 = vmul.f32 1.050701, %v298_v12 }
 0x184   :  { %385 = vrot.lane.b32.xlu0 %v934_v8, %s672_s28  ;;  %311 = vrot.lane.b32.xlu1 %v934_v8, %s670_s24 }
 0x188   :  { %449 = vrot.lane.b32.xlu0 %v934_v8, %s674_s29  ;;  %337 = vrot.lane.b32.xlu1 %v934_v8, %s669_s23 }
 0x18c   :  { %339 = vrot.lane.b32.xlu0 %v944_v15, %s669_s23  ;;  %361 = vrot.lane.b32.xlu1 %v934_v8, %s671_s27 }
 0x190   :  { %490 = vperm.xlu0 %648, %v779_v6   ;;  %425 = vrot.lane.b32.xlu1 %v934_v8, %s673_s0 }
 0x194   :  { %475 = vrot.lane.b32.xlu0 %v944_v15, %s677_s30  ;;  %313 = vrot.lane.b32.xlu1 %v944_v15, %s670_s24 }
 0x195   :  { %650 = vset.pattern.permute.xlu0 %v681_v9 }
 0x198   :  { %497 = vrot.lane.b32.xlu0 %v934_v8, %s678_s7  ;;  %506 = vperm.xlu1 %649, %v772_v5   ;;  %v322_v5 = vpop.permute.xlu1 %321 }
 0x19c   :  { %473 = vrot.lane.b32.xlu1 %v934_v8, %s677_s30  ;;  %558 = vperm.xlu0 %650, %v767_v4  }
 0x1a0   :  { %514 = vperm.xlu1 %649, %v779_v6   ;;  %652 = vset.pattern.permute.xlu0 %v682_v10  ;;  %v305_v6 = vpop.permute.xlu1 %304 }
 0x1a4   :  { %363 = vrot.lane.b32.xlu1 %v944_v15, %s671_s27  ;;  %v347_v9 = vpop.permute.xlu1 %346 }
 0x1a5   :  { %651 = vset.pattern.permute.xlu1 %v682_v10  ;;  %v331_v10 = vpop.permute.xlu0 %330 }
 0x1a8   :  { %387 = vrot.lane.b32.xlu1 %v944_v15, %s672_s28  ;;  %v371_v16 = vpop.permute.xlu1 %370 }
 0x1a9   :  { %v309_v26 = vpop.permute.xlu0 %308 }
 0x1ac   :  { %427 = vrot.lane.b32.xlu1 %v944_v15, %s673_s0  ;;  %v379_v1 = vpop.permute.xlu1 %378 }
 0x1ad   :  { %v355_v28 = vpop.permute.xlu0 %354 }
 0x1b0   :  { %451 = vrot.lane.b32.xlu1 %v944_v15, %s674_s29  ;;  %v411_v0 = vpop.permute.xlu1 %410 }
 0x1b1   :  { %v982_v18 = vpop.permute.xlu0 %394  ;;  %v413_v2 = vmul.f32 %v411_v0, %v934_v8 }
 0x1b4   :  { %499 = vrot.lane.b32.xlu1 %v944_v15, %s678_s7  ;;  %v978_v27 = vpop.permute.xlu1 %434 }
 0x1b5   :  { %v986_v30 = vpop.permute.xlu0 %402 }
 0x1b8   :  { %564 = vperm.xlu1 %651, %v767_v4   ;;  %v980_v17 = vpop.permute.xlu1 %442 }
 0x1b9   :  { %v419_v31 = vpop.permute.xlu0 %418 }
 0x1bc   :  { %v984_v29 = vpop.permute.xlu1 %482 }
 0x1bd   :  { %v988_v34 = vpop.permute.xlu0 %458 }
 0x1c1   :  { %v990_v37 = vpop.permute.xlu0 %466 }
 0x1f6   :  { %v312_v4 = vpop.permute.xlu1 %311  ;;  %v386_v39 = vpop.permute.xlu0 %385 }
 0x1fa   :  { %v338_v33 = vpop.permute.xlu1 %337  ;;  %v994_v41 = vpop.permute.xlu0 %449 }
 0x1fe   :  { %v362_v36 = vpop.permute.xlu1 %361  ;;  %v340_v49 = vpop.permute.xlu0 %339 }
 0x1ff   :  { %v341_v55 = vsel %vm111_vm0, %v338_v33, %v340_v49  ;;  %v342_v57 = vsel %vm111_vm0, %v340_v49, %v338_v33 }
 0x200   :  { %v344_v59 = vmul.f32 %v341_v55, %v825_v24  ;;  %v343_v63 = vmul.f32 %v342_v57, %v816_v21  ;;  %v421_v57 = vmul.f32 %v419_v31, %v934_v8 }
 0x202   :  { %v992_v38 = vpop.permute.xlu1 %425  ;;  %v350_v7 = vmul.f32 %v347_v9, %v344_v59  ;;  %v349_v33 = vmul.f32 %v347_v9, %v343_v63 }
 0x206   :  { %v314_v40 = vpop.permute.xlu1 %313 }
 0x207   :  { %v315_v46 = vsel %vm100_vm1, %v312_v4, %v314_v40  ;;  %v316_v48 = vsel %vm100_vm1, %v314_v40, %v312_v4  ;;  %v357_v40 = vmul.f32 %v355_v28, %v343_v63 }
 0x208   :  { %v318_v51 = vmul.f32 %v315_v46, %v822_v23  ;;  %v317_v54 = vmul.f32 %v316_v48, %v819_v22  ;;  %v358_v46 = vmul.f32 %v355_v28, %v344_v59 }
 0x20a   :  { %v325_v56 = vmul.f32 %v322_v5, %v318_v51  ;;  %v324_v60 = vmul.f32 %v322_v5, %v317_v54  ;;  %v333_v61 = vmul.f32 %v331_v10, %v317_v54  ;;  %v334_v62 = vmul.f32 %v331_v10, %v318_v51 }
 0x20c   :  { %v327_v23 = vadd.f32 %v325_v56, %v305_v6  ;;  %v326_v11 = vadd.f32 %v324_v60, %v305_v6  ;;  %v335_v24 = vadd.f32 %v333_v61, %v309_v26  ;;  %v336_v5 = vadd.f32 %v334_v62, %v309_v26 }
 0x20d   :  { %v414_v56 = vmul.f32 %v411_v0, %v944_v15  ;;  %v422_v61 = vmul.f32 %v419_v31, %v944_v15 }
 0x20e   :  { %v352_v48 = vadd.f32 %v350_v7, %v327_v23  ;;  %v351_v9 = vadd.f32 %v349_v33, %v326_v11  ;;  %v360_v28 = vadd.f32 %v358_v46, %v336_v5 }
 0x20f   :  { %v1013_v22 = vpop.permute.xlu0 %490 }
 0x217   :  { %v998_v47 = vpop.permute.xlu1 %506 }
 0x21b   :  { %v474_v52 = vpop.permute.xlu1 %473 }
 0x21f   :  { %v1008_v58 = vpop.permute.xlu1 %514 }
 0x223   :  { %v364_v3 = vpop.permute.xlu1 %363 }
 0x224   :  { %v365_v12 = vsel %vm122_vm2, %v362_v36, %v364_v3  ;;  %v366_v4 = vsel %vm122_vm2, %v364_v3, %v362_v36  ;;  %v359_v36 = vadd.f32 %v357_v40, %v335_v24 }
 0x225   :  { %v367_v10 = vmul.f32 %v366_v4, %v845_v42  ;;  %v368_v21 = vmul.f32 %v365_v12, %v848_v43  ;;  %v476_v43 = vpop.permute.xlu0 %475 }
 0x227   :  { %v373_v49 = vmul.f32 %v371_v16, %v367_v10  ;;  %v374_v51 = vmul.f32 %v371_v16, %v368_v21  ;;  %v381_v54 = vmul.f32 %v379_v1, %v367_v10  ;;  %v382_v6 = vmul.f32 %v379_v1, %v368_v21  ;;  %v388_v55 = vpop.permute.xlu1 %387 }
 0x228   :  { %v389_v26 = vsel %vm133_vm3, %v386_v39, %v388_v55  ;;  %v390_v42 = vsel %vm133_vm3, %v388_v55, %v386_v39  ;;  %v477_v16 = vsel %vm168_vm6, %v474_v52, %v476_v43  ;;  %v478_v1 = vsel %vm168_vm6, %v476_v43, %v474_v52 }
 0x229   :  { %v376_v59 = vadd.f32 %v374_v51, %v352_v48  ;;  %v391_v0 = vmul.f32 %v390_v42, %v851_v44  ;;  %v392_v60 = vmul.f32 %v389_v26, %v854_v45  ;;  %v375_v62 = vadd.f32 %v373_v49, %v351_v9 }
 0x22a   :  { %v383_v63 = vadd.f32 %v381_v54, %v359_v36  ;;  %v384_v39 = vadd.f32 %v382_v6, %v360_v28  ;;  %v479_v52 = vmul.f32 %v477_v16, %v893_v25  ;;  %v480_v44 = vmul.f32 %v478_v1, %v896_v13 }
 0x22b   :  { %v428_v23 = vpop.permute.xlu1 %427  ;;  %v397_v3 = vmul.f32 %v982_v18, %v391_v0  ;;  %v398_v7 = vmul.f32 %v982_v18, %v392_v60  ;;  %v405_v11 = vmul.f32 %v986_v30, %v391_v0  ;;  %v406_v12 = vmul.f32 %v986_v30, %v392_v60 }
 0x22c   :  { %v429_v45 = vsel %vm146_vm4, %v992_v38, %v428_v23  ;;  %v430_v31 = vsel %vm146_vm4, %v428_v23, %v992_v38  ;;  %v485_v51 = vmul.f32 %v984_v29, %v479_v52  ;;  %v486_v54 = vmul.f32 %v984_v29, %v480_v44 }
 0x22d   :  { %v399_v4 = vadd.f32 %v397_v3, %v375_v62  ;;  %v400_v24 = vadd.f32 %v398_v7, %v376_v59  ;;  %v407_v5 = vadd.f32 %v405_v11, %v383_v63  ;;  %v408_v18 = vadd.f32 %v406_v12, %v384_v39 }
 0x22e   :  { %v431_v10 = vmul.f32 %v429_v45, %v861_v50  ;;  %v432_v30 = vmul.f32 %v430_v31, %v868_v53  ;;  %v493_v6 = vmul.f32 %v1013_v22, %v479_v52 }
 0x22f   :  { %v452_v21 = vpop.permute.xlu1 %451  ;;  %v415_v25 = vadd.f32 %v413_v2, %v399_v4  ;;  %v416_v33 = vadd.f32 %v414_v56, %v400_v24  ;;  %v423_v13 = vadd.f32 %v421_v57, %v407_v5  ;;  %v424_v40 = vadd.f32 %v422_v61, %v408_v18  ;;  %v498_v2 = vpop.permute.xlu0 %497 }
 0x230   :  { %v437_v46 = vmul.f32 %v978_v27, %v431_v10  ;;  %v438_v48 = vmul.f32 %v978_v27, %v432_v30  ;;  %v445_v49 = vmul.f32 %v980_v17, %v431_v10  ;;  %v446_v38 = vmul.f32 %v980_v17, %v432_v30 }
 0x231   :  { %v453_v50 = vsel %vm157_vm5, %v994_v41, %v452_v21  ;;  %v454_v53 = vsel %vm157_vm5, %v452_v21, %v994_v41  ;;  %v494_v27 = vmul.f32 %v1013_v22, %v480_v44 }
 0x232   :  { %v439_v55 = vadd.f32 %v437_v46, %v415_v25  ;;  %v440_v56 = vadd.f32 %v438_v48, %v416_v33  ;;  %v455_v57 = vmul.f32 %v453_v50, %v887_v19  ;;  %v456_v29 = vmul.f32 %v454_v53, %v890_v20 }
 0x233   :  { %v500_v17 = vpop.permute.xlu1 %499  ;;  %v447_v43 = vadd.f32 %v445_v49, %v423_v13  ;;  %v448_v41 = vadd.f32 %v446_v38, %v424_v40 }
 0x234   :  { %v501_v26 = vsel %vm179_vm7, %v498_v2, %v500_v17  ;;  %v502_v42 = vsel %vm179_vm7, %v500_v17, %v498_v2  ;;  %v461_v22 = vmul.f32 %v988_v34, %v455_v57  ;;  %v462_v28 = vmul.f32 %v988_v34, %v456_v29 }
 0x235   :  { %v503_v9 = vmul.f32 %v920_v35, %v501_v26  ;;  %v504_v36 = vmul.f32 %v915_v32, %v502_v42  ;;  %v469_v19 = vmul.f32 %v990_v37, %v455_v57  ;;  %v470_v20 = vmul.f32 %v990_v37, %v456_v29 }
 0x236   :  { %v463_v0 = vadd.f32 %v461_v22, %v439_v55  ;;  %v464_v35 = vadd.f32 %v462_v28, %v440_v56 }
 0x237   :  { %v509_v59 = vmul.f32 %v998_v47, %v503_v9  ;;  %v510_v16 = vmul.f32 %v998_v47, %v504_v36  ;;  %v517_v14 = vmul.f32 %v1008_v58, %v503_v9  ;;  %v518_v1 = vmul.f32 %v1008_v58, %v504_v36  ;;  %v565_v17 = vpop.permute.xlu1 %564 }
 0x238   :  { %v471_v60 = vadd.f32 %v469_v19, %v447_v43  ;;  %v472_v32 = vadd.f32 %v470_v20, %v448_v41  ;;  %v487_v61 = vadd.f32 %v485_v51, %v463_v0  ;;  %v488_v62 = vadd.f32 %v486_v54, %v464_v35 }
 0x23a   :  { %v495_v63 = vadd.f32 %v493_v6, %v471_v60  ;;  %v496_v34 = vadd.f32 %v494_v27, %v472_v32  ;;  %v511_v39 = vadd.f32 %v509_v59, %v487_v61  ;;  %v512_v23 = vadd.f32 %v510_v16, %v488_v62  ;;  %v559_v27 = vpop.permute.xlu0 %558 }
 0x23c   :  { %v519_v3 = vadd.f32 %v517_v14, %v495_v63  ;;  %v520_v37 = vadd.f32 %v518_v1, %v496_v34  ;;  %v523_v7 = vmin.f32 %v511_v39, 0.0  ;;  %v524_v11 = vmin.f32 %v512_v23, 0.0 }
 0x23d   :  { %vm521_vm11 = vcmp.gt.f32.partialorder %v511_v39, 0.0  ;;  %vm522_vm12 = vcmp.gt.f32.partialorder %v512_v23, 0.0 }
 0x23e   :  { %v539_v12 = vmin.f32 %v519_v3, 0.0  ;;  %v540_v47 = vmin.f32 %v520_v37, 0.0  ;;  %v525_v52 = vmul.f32 1.442695, %v523_v7  ;;  %v527_v44 = vmul.f32 1.442695, %v524_v11 }
 0x23f   :  { %vm537_vm13 = vcmp.gt.f32.partialorder %v519_v3, 0.0  ;;  %vm538_vm14 = vcmp.gt.f32.partialorder %v520_v37, 0.0 }
 0x240   :  { %v541_v45 = vmul.f32 1.442695, %v539_v12  ;;  %v543_v58 = vmul.f32 1.442695, %v540_v47  ;;  %657 = vpow2.f32 %v525_v52 }
 0x241   :  { %659 = vpow2.f32 %v527_v44 }
 0x242   :  { %661 = vpow2.f32 %v541_v45 }
 0x243   :  { %663 = vpow2.f32 %v543_v58 }
 0x24a   :  { %v658_v31 = vpop.eup %657 }
 0x24b   :  { %v660_v4 = vpop.eup %659  ;;  %v596_v24 = vadd.f32 -1.0, %v658_v31 }
 0x24c   :  { %v662_v5 = vpop.eup %661  ;;  %v597_v18 = vadd.f32 -1.0, %v660_v4 }
 0x24d   :  { %v664_v10 = vpop.eup %663  ;;  %v531_v30 = vmul.f32 1.6732632, %v596_v24  ;;  %v598_v21 = vadd.f32 -1.0, %v662_v5 }
 0x24e   :  { %v532_v25 = vmul.f32 1.6732632, %v597_v18  ;;  %v599_v33 = vadd.f32 -1.0, %v664_v10 }
 0x24f   :  { %v533_v13 = vsel %vm521_vm11, %v511_v39, %v531_v30  ;;  %v547_v40 = vmul.f32 1.6732632, %v598_v21 }
 0x250   :  { %v534_v46 = vsel %vm522_vm12, %v512_v23, %v532_v25  ;;  %v535_v48 = vmul.f32 1.050701, %v533_v13  ;;  %v548_v49 = vmul.f32 1.6732632, %v599_v33 }
 0x251   :  { %v536_v38 = vmul.f32 1.050701, %v534_v46  ;;  %v549_v51 = vsel %vm537_vm13, %v519_v3, %v547_v40 }
 0x252   :  { %v550_v54 = vsel %vm538_vm14, %v520_v37, %v548_v49  ;;  %v551_v50 = vmul.f32 1.050701, %v549_v51  ;;  %v553_v53 = vadd.f32 %v535_v48, %v934_v8 }
 0x253   :  { %v552_v2 = vmul.f32 1.050701, %v550_v54  ;;  %v554_v6 = vadd.f32 %v536_v38, %v944_v15 }
 0x254   :  { %v555_v55 = vadd.f32 %v553_v53, %v551_v50 }
 0x255   :  { %v556_v56 = vadd.f32 %v554_v6, %v552_v2 }
 0x256   :  { %v561_v57 = vmul.f32 %v559_v27, %v555_v55 }
 0x257   :  { %v562_v29 = vmul.f32 %v559_v27, %v556_v56 }
 0x258   :  { %v567_v26 = vadd.f32 %v565_v17, %v561_v57 }
 0x259   :  { %v568_v42 = vadd.f32 %v565_v17, %v562_v29 }
 0x25a   :  { %v571_v43 = vmin.f32 %v567_v26, 0.0  ;;  %vm569_vm15 = vcmp.gt.f32.partialorder %v567_v26, 0.0 }
 0x25b   :  { %v572_v41 = vmin.f32 %v568_v42, 0.0  ;;  %vm570_vm0 = vcmp.gt.f32.partialorder %v568_v42, 0.0 }
 0x25c   :  { %v573_v9 = vmul.f32 1.442695, %v571_v43 }
 0x25d   :  { %v575_v36 = vmul.f32 1.442695, %v572_v41 }
 0x25e   :  { %665 = vpow2.f32 %v573_v9 }
 0x25f   :  { %667 = vpow2.f32 %v575_v36 }
 0x268   :  { %v666_v22 = vpop.eup %665 }
 0x269   :  { %v668_v28 = vpop.eup %667  ;;  %v600_v8 = vadd.f32 -1.0, %v666_v22 }
 0x26a   :  { %v601_v19 = vadd.f32 -1.0, %v668_v28 }
 0x26b   :  { %v579_v20 = vmul.f32 1.6732632, %v600_v8 }
 0x26c   :  { %v580_v15 = vmul.f32 1.6732632, %v601_v19 }
 0x26d   :  { %v581_v59 = vsel %vm569_vm15, %v567_v26, %v579_v20 }
 0x26e   :  { %v582_v16 = vsel %vm570_vm0, %v568_v42, %v580_v15  ;;  %v583_v14 = vmul.f32 1.050701, %v581_v59 }
 0x26f   :  { %v584_v1 = vmul.f32 1.050701, %v582_v16 }
 0x270   :  { %585 = vst [vmem:[%s1092_s6] sm:$0xff] %v583_v14 }
 0x271   :  { %586 = vst [vmem:[%s1092_s6 + $0x8] sm:$0xff] %v584_v1 }

</bundles_post_ra>
